<compile_context>
chip_gen: v7x
topology: tpu7x:2x2x1
jax: 0.10.0
libtpu: 0.0.40
codegen_flags: <defaults>
</compile_context>

<pallas_src>
import jax
import jax.numpy as jnp
from jax.experimental import pallas as pl
from jax.experimental.pallas import tpu as pltpu


def _emb_sums_kernel(t_ref, s_ref, o_ref, acc_ref):
    """Accumulate per-sample reductions over the row (reduction) axis.

    t_ref, s_ref : (1, R, 128) input tiles (native dtype)
    o_ref        : (1, 8, 128) f32 output slab; rows 0..3 hold lane-partials
                   of [sq_diff, t.s, t.t, s.s]; rows 4..7 stay zero.
    acc_ref      : (8, 128) f32 VMEM accumulator, resident across the
                   reduction axis.
    """
    k = pl.program_id(1)

    @pl.when(k == 0)
    def _():
        acc_ref[...] = jnp.zeros_like(acc_ref)

    t = t_ref[0].astype(jnp.float32)   # (R, 128)
    s = s_ref[0].astype(jnp.float32)
    d = t - s

    # Direct slice updates (no concatenate -> no per-step lane shuffles);
    # four sub-vreg stores per BLOCK, negligible next to the R-row reductions.
    acc_ref[0:1, :] += jnp.sum(d * d, axis=0, keepdims=True)
    acc_ref[1:2, :] += jnp.sum(t * s, axis=0, keepdims=True)
    acc_ref[2:3, :] += jnp.sum(t * t, axis=0, keepdims=True)
    acc_ref[3:4, :] += jnp.sum(s * s, axis=0, keepdims=True)

    @pl.when(k == pl.num_programs(1) - 1)
    def _():
        o_ref[0] = acc_ref[...]


def _pick_block_rows(n_rows, max_rows):
    """Pick the reduction block height R.

    Returns the full extent when it fits (single full-dim block, no alignment
    requirement); otherwise the largest sublane-aligned divisor of n_rows that
    is <= max_rows; otherwise a sublane-aligned cap (the uncovered row tail is
    folded into the pure-JAX correction instead of a giant fallback block).
    """
    if n_rows <= max_rows:
        return n_rows
    r = (max_rows // 8) * 8
    while r >= 8:
        if n_rows % r == 0:
            return r
        r -= 8
    return (max_rows // 8) * 8


def _jnp_sums(t_flat, s_flat):
    """Pure-JAX [sum((t-s)^2), sum(t*s), sum(t*t), sum(s*s)] per sample."""
    tf = t_flat.astype(jnp.float32)
    sf = s_flat.astype(jnp.float32)
    d = tf - sf
    return jnp.stack(
        [jnp.sum(d * d, axis=1), jnp.sum(tf * sf, axis=1),
         jnp.sum(tf * tf, axis=1), jnp.sum(sf * sf, axis=1)], axis=1)


def _per_layer_sums(t_flat, s_flat, max_block_rows=4096):
    """Per-sample sums (B, 4) via the Pallas streaming-reduction kernel."""
    B, D = t_flat.shape
    n_rows = D // 128

    if n_rows < 8:
        # Tiny feature dim: not worth a kernel launch.
        return _jnp_sums(t_flat, s_flat)

    R = _pick_block_rows(n_rows, max_block_rows)
    n_main = (n_rows // R) * R          # rows covered by the kernel
    d_main = n_main * 128               # elements covered by the kernel

    t3 = t_flat[:, :d_main].reshape(B, n_main, 128)
    s3 = s_flat[:, :d_main].reshape(B, n_main, 128)
    grid = (B, n_main // R)

    out = pl.pallas_call(
        _emb_sums_kernel,
        out_shape=jax.ShapeDtypeStruct((B, 8, 128), jnp.float32),
        grid_spec=pltpu.PrefetchScalarGridSpec(
            num_scalar_prefetch=0,
            grid=grid,
            in_specs=[
                pl.BlockSpec((1, R, 128), lambda b, k: (b, k, 0)),
                pl.BlockSpec((1, R, 128), lambda b, k: (b, k, 0)),
            ],
            out_specs=pl.BlockSpec((1, 8, 128), lambda b, k: (b, 0, 0)),
            scratch_shapes=[pltpu.VMEM((8, 128), jnp.float32)],
        ),
        compiler_params=pltpu.CompilerParams(
            dimension_semantics=("parallel", "arbitrary"),
            vmem_limit_bytes=32 * 1024 * 1024,
        ),
    )(t3, s3)

    sums = jnp.sum(out[:, 0:4, :], axis=-1)          # (B, 4)

    if d_main < D:
        # Tail (lane remainder and/or unaligned row tail): tiny pure-JAX
        # correction instead of padding + re-copying the whole tensor in HBM.
        sums = sums + _jnp_sums(t_flat[:, d_main:], s_flat[:, d_main:])
    return sums


def embedding_loss(teacher_embeddings, student_embeddings):
    """JAX/Pallas equivalent of EmbeddingLoss.forward."""
    # TODO(synk): layers are still one pallas_call each; fusing them behind a
    # scalar-prefetch offset table would amortize launch cost for many layers.
    eps = 1e-8  # torch.nn.CosineSimilarity default eps
    total = jnp.float32(0.0)
    for t, s in zip(teacher_embeddings, student_embeddings):
        B = t.shape[0]
        t_flat = t.reshape(B, -1)   # free view, native dtype (no HBM copy)
        s_flat = s.reshape(B, -1)
        n_elems = t_flat.size       # denominator of the mean in MSELoss

        sums = _per_layer_sums(t_flat, s_flat)
        sq, ts, tt, ss = sums[:, 0], sums[:, 1], sums[:, 2], sums[:, 3]

        mse = jnp.sum(sq) / n_elems
        # PyTorch CosineSimilarity clamps each norm separately with eps.
        cos = ts / (jnp.maximum(jnp.sqrt(tt), eps) *
                    jnp.maximum(jnp.sqrt(ss), eps))

        total = total + 0.5 * mse + jnp.mean(1.0 - cos)
    return total


def _reference_loss(teacher_embeddings, student_embeddings):
    """Pure-JAX reference for correctness checking."""
    eps = 1e-8
    total = jnp.float32(0.0)
    for t, s in zip(teacher_embeddings, student_embeddings):
        B = t.shape[0]
        tf = t.reshape(B, -1).astype(jnp.float32)
        sf = s.reshape(B, -1).astype(jnp.float32)
        mse = jnp.mean((tf - sf) ** 2)
        num = jnp.sum(tf * sf, axis=1)
        den = (jnp.maximum(jnp.linalg.norm(tf, axis=1), eps) *
               jnp.maximum(jnp.linalg.norm(sf, axis=1), eps))
        cos = num / den
        total = total + 0.5 * mse + jnp.mean(1.0 - cos)
    return total


if __name__ == "__main__":
    key = jax.random.PRNGKey(0)
    k1, k2, k3, k4 = jax.random.split(key, 4)

    # Two "layers" of embeddings with NCHW-style shapes (B, C, H, W).
    teacher = [
        jax.random.normal(k1, (2, 4, 16, 16), dtype=jnp.float32),
        jax.random.normal(k2, (2, 8, 8, 8), dtype=jnp.float32),
    ]
    student = [
        jax.random.normal(k3, (2, 4, 16, 16), dtype=jnp.float32),
        jax.random.normal(k4, (2, 8, 8, 8), dtype=jnp.float32),
    ]

    loss = embedding_loss(teacher, student)
    jax.block_until_ready(loss)

    ref = _reference_loss(teacher, student)
    assert jnp.allclose(loss, ref, rtol=1e-5, atol=1e-5), (loss, ref)

    print("KERNEL_OK")
</pallas_src>

<mosaic_0001>
module attributes {stable_mosaic.version = 11 : i64} {
  func.func @_emb_sums_kernel(%arg0: i32, %arg1: i32, %arg2: memref<1x8x128xf32, #tpu.memory_space<vmem>>, %arg3: memref<1x8x128xf32, #tpu.memory_space<vmem>>, %arg4: memref<1x8x128xf32, #tpu.memory_space<vmem>>, %arg5: memref<8x128xf32, #tpu.memory_space<vmem>>) attributes {dimension_semantics = [#tpu.dimension_semantics<parallel>, #tpu.dimension_semantics<arbitrary>], iteration_bounds = array<i64: 2, 1>, scalar_prefetch = 0 : i64, scratch_operands = 1 : i64, tpu.core_type = #tpu.core_type<tc>, window_params = [{transform_indices = @transform_0, window_bounds = array<i64: 1, 8, 128>}, {transform_indices = @transform_1, window_bounds = array<i64: 1, 8, 128>}, {transform_indices = @transform_2, window_bounds = array<i64: 1, 8, 128>}]} {
    %c0_i32 = arith.constant 0 : i32
    %0 = arith.cmpi eq, %arg1, %c0_i32 : i32
    %1 = arith.extui %0 : i1 to i32
    %c0_i32_0 = arith.constant 0 : i32
    %2 = arith.cmpi ne, %1, %c0_i32_0 : i32
    scf.if %2 {
      %cst_24 = arith.constant 0.000000e+00 : f32
      %35 = vector.broadcast %cst_24 : f32 to vector<8x128xf32>
      %c0_25 = arith.constant 0 : index
      %c0_26 = arith.constant 0 : index
      %36 = vector.load %arg5[%c0_25, %c0_26] : memref<8x128xf32, #tpu.memory_space<vmem>>, vector<8x128xf32>
      tpu.vector_store %arg5[%c0_25, %c0_26], %35 {strides = array<i32>} : memref<8x128xf32, #tpu.memory_space<vmem>>, vector<8x128xf32>,
    } else {
    }
    %c0 = arith.constant 0 : index
    %c0_1 = arith.constant 0 : index
    %c0_2 = arith.constant 0 : index
    %3 = vector.load %arg2[%c0, %c0_1, %c0_2] : memref<1x8x128xf32, #tpu.memory_space<vmem>>, vector<1x8x128xf32>
    %4 = vector.shape_cast %3 : vector<1x8x128xf32> to vector<8x128xf32>
    %c0_3 = arith.constant 0 : index
    %c0_4 = arith.constant 0 : index
    %c0_5 = arith.constant 0 : index
    %5 = vector.load %arg3[%c0_3, %c0_4, %c0_5] : memref<1x8x128xf32, #tpu.memory_space<vmem>>, vector<1x8x128xf32>
    %6 = vector.shape_cast %5 : vector<1x8x128xf32> to vector<8x128xf32>
    %7 = arith.subf %4, %6 : vector<8x128xf32>
    %c0_6 = arith.constant 0 : index
    %c0_7 = arith.constant 0 : index
    %8 = vector.load %arg5[%c0_6, %c0_7] : memref<8x128xf32, #tpu.memory_space<vmem>>, vector<1x128xf32>
    %9 = arith.mulf %7, %7 : vector<8x128xf32>
    %cst = arith.constant dense<0.000000e+00> : vector<128xf32>
    %10 = vector.multi_reduction <add>, %9, %cst [0] : vector<8x128xf32> to vector<128xf32>
    %11 = vector.shape_cast %10 : vector<128xf32> to vector<1x128xf32>
    %12 = arith.addf %8, %11 : vector<1x128xf32>
    %c0_8 = arith.constant 0 : index
    %c0_9 = arith.constant 0 : index
    %13 = vector.load %arg5[%c0_8, %c0_9] : memref<8x128xf32, #tpu.memory_space<vmem>>, vector<1x128xf32>
    tpu.vector_store %arg5[%c0_8, %c0_9], %12 {strides = array<i32>} : memref<8x128xf32, #tpu.memory_space<vmem>>, vector<1x128xf32>,
    %c1 = arith.constant 1 : index
    %c0_10 = arith.constant 0 : index
    %14 = vector.load %arg5[%c1, %c0_10] : memref<8x128xf32, #tpu.memory_space<vmem>>, vector<1x128xf32>
    %15 = arith.mulf %4, %6 : vector<8x128xf32>
    %cst_11 = arith.constant dense<0.000000e+00> : vector<128xf32>
    %16 = vector.multi_reduction <add>, %15, %cst_11 [0] : vector<8x128xf32> to vector<128xf32>
    %17 = vector.shape_cast %16 : vector<128xf32> to vector<1x128xf32>
    %18 = arith.addf %14, %17 : vector<1x128xf32>
    %c1_12 = arith.constant 1 : index
    %c0_13 = arith.constant 0 : index
    %19 = vector.load %arg5[%c1_12, %c0_13] : memref<8x128xf32, #tpu.memory_space<vmem>>, vector<1x128xf32>
    tpu.vector_store %arg5[%c1_12, %c0_13], %18 {strides = array<i32>} : memref<8x128xf32, #tpu.memory_space<vmem>>, vector<1x128xf32>,
    %c2 = arith.constant 2 : index
    %c0_14 = arith.constant 0 : index
    %20 = vector.load %arg5[%c2, %c0_14] : memref<8x128xf32, #tpu.memory_space<vmem>>, vector<1x128xf32>
    %21 = arith.mulf %4, %4 : vector<8x128xf32>
    %cst_15 = arith.constant dense<0.000000e+00> : vector<128xf32>
    %22 = vector.multi_reduction <add>, %21, %cst_15 [0] : vector<8x128xf32> to vector<128xf32>
    %23 = vector.shape_cast %22 : vector<128xf32> to vector<1x128xf32>
    %24 = arith.addf %20, %23 : vector<1x128xf32>
    %c2_16 = arith.constant 2 : index
    %c0_17 = arith.constant 0 : index
    %25 = vector.load %arg5[%c2_16, %c0_17] : memref<8x128xf32, #tpu.memory_space<vmem>>, vector<1x128xf32>
    tpu.vector_store %arg5[%c2_16, %c0_17], %24 {strides = array<i32>} : memref<8x128xf32, #tpu.memory_space<vmem>>, vector<1x128xf32>,
    %c3 = arith.constant 3 : index
    %c0_18 = arith.constant 0 : index
    %26 = vector.load %arg5[%c3, %c0_18] : memref<8x128xf32, #tpu.memory_space<vmem>>, vector<1x128xf32>
    %27 = arith.mulf %6, %6 : vector<8x128xf32>
    %cst_19 = arith.constant dense<0.000000e+00> : vector<128xf32>
    %28 = vector.multi_reduction <add>, %27, %cst_19 [0] : vector<8x128xf32> to vector<128xf32>
    %29 = vector.shape_cast %28 : vector<128xf32> to vector<1x128xf32>
    %30 = arith.addf %26, %29 : vector<1x128xf32>
    %c3_20 = arith.constant 3 : index
    %c0_21 = arith.constant 0 : index
    %31 = vector.load %arg5[%c3_20, %c0_21] : memref<8x128xf32, #tpu.memory_space<vmem>>, vector<1x128xf32>
    tpu.vector_store %arg5[%c3_20, %c0_21], %30 {strides = array<i32>} : memref<8x128xf32, #tpu.memory_space<vmem>>, vector<1x128xf32>,
    %c0_i32_22 = arith.constant 0 : i32
    %32 = arith.cmpi eq, %arg1, %c0_i32_22 : i32
    %33 = arith.extui %32 : i1 to i32
    %c0_i32_23 = arith.constant 0 : i32
    %34 = arith.cmpi ne, %33, %c0_i32_23 : i32
    scf.if %34 {
      %c0_24 = arith.constant 0 : index
      %c0_25 = arith.constant 0 : index
      %35 = vector.load %arg5[%c0_24, %c0_25] : memref<8x128xf32, #tpu.memory_space<vmem>>, vector<8x128xf32>
      %c0_26 = arith.constant 0 : index
      %c0_27 = arith.constant 0 : index
      %c0_28 = arith.constant 0 : index
      %36 = vector.load %arg4[%c0_26, %c0_27, %c0_28] : memref<1x8x128xf32, #tpu.memory_space<vmem>>, vector<1x8x128xf32>
      %37 = vector.shape_cast %36 : vector<1x8x128xf32> to vector<8x128xf32>
      %38 = vector.shape_cast %35 : vector<8x128xf32> to vector<1x8x128xf32>
      tpu.vector_store %arg4[%c0_26, %c0_27, %c0_28], %38 {strides = array<i32>} : memref<1x8x128xf32, #tpu.memory_space<vmem>>, vector<1x8x128xf32>,
    } else {
    }
    return
  }
  func.func @transform_0(%arg0: i32, %arg1: i32) -> (i32, i32, i32) {
    %c0_i32 = arith.constant 0 : i32
    %c0_i32_0 = arith.constant 0 : i32
    return %arg0, %arg1, %c0_i32 : i32, i32, i32
  }
  func.func @transform_1(%arg0: i32, %arg1: i32) -> (i32, i32, i32) {
    %c0_i32 = arith.constant 0 : i32
    %c0_i32_0 = arith.constant 0 : i32
    return %arg0, %arg1, %c0_i32 : i32, i32, i32
  }
  func.func @transform_2(%arg0: i32, %arg1: i32) -> (i32, i32, i32) {
    %c0_i32 = arith.constant 0 : i32
    %c0_i32_0 = arith.constant 0 : i32
    %c0_i32_1 = arith.constant 0 : i32
    return %arg0, %c0_i32, %c0_i32_0 : i32, i32, i32
  }
}

</mosaic_0001>

<bundles_post_ra>
// kernel: tpu_custom_call.1
= control target key start
LH: loop header
LB: loop body
LE: loop exit
PB: predicated region body
PF: predicated region fallthrough
CT: control target
= control target key end

     0   :  { %7 = vsyncpa [#allocation4], 0  ;;  %s860_s0 = inlined_call_operand.hbm [shape: f32[2,8,128], index: 0, kind: input, shape index: {}]   ;;  %s861_s1 = inlined_call_operand.hbm [shape: f32[2,8,128], index: 1, kind: input, shape index: {}]   ;;  %s862_s2 = inlined_call_operand.hbm [shape: f32[2,8,128], index: 2, kind: output, shape index: {}]  }
   0x1   :  { %9 = vsyncpa [#allocation4 + $0x1], 0 }
   0x2   :  { %10 = vsyncpa [#allocation7], 0 }
   0x3   :  { %12 = vsyncpa [#allocation7 + $0x1], 0 }
   0x4   :  { %13 = vsyncpa [#allocation5], 0 }
   0x5   :  { %15 = vsyncpa [#allocation5 + $0x1], 0  ;;  %s635_s9 = smov 0   ;;  %s637_s10 = smov 0  }
   0x6   :  { %s639_s11 = smov 0   ;;  %s641_s12 = smov 0  }
   0x7   :  { %s643_s13 = smov 0   ;;  %s645_s14 = smov 0  }
   0x8 LB: > { %s384_s15 = sadd.s32 4294967295, %s614_s14   ;;  %s385_s16 = sadd.s32 4294967294, %s614_s14   ;;  %s614_s14 = sphi %s645_s14, %s21_s14   ;;  %s610_s13 = sphi %s643_s13, %s882_s13   ;;  %s606_s12 = sphi %s641_s12, %s881_s12   ;;  %s602_s11 = sphi %s639_s11, %s880_s11   ;;  %s598_s10 = sphi %s637_s10, %s879_s10   ;;  %s594_s9 = sphi %s635_s9, %s878_s9  }
   0x9   : > { %s33_s17 = sadd.s32 1, %s610_s13  ;;  %s42_s18 = sadd.s32 1, %s602_s11 }
   0xa   : > { %p35_p0 = scmp.ge.s32.totalorder %s33_s17, 2  ;;  %p49_p1 = scmp.ne.s32.totalorder %s602_s11, %s598_s10 }
   0xb   : > { %p50_p2 = scmp.eq.s32.totalorder %s614_s14, 0  ;;  %p55_p3 = scmp.ne.s32.totalorder %s598_s10, %s594_s9 }
   0xc   : > { %s884_s17 = smov (%p35_p0, %s33_s17), 0  ;;  %p56_p5 = scmp.eq.s32.totalorder %s384_s15, 0 }
   0xd   : > { %p676_p4 = por %p50_p2, %p49_p1  ;;  %s37_s20 = ssub.s32 %s610_s13, %s884_s17 }
   0xe   : > { %p107_p6 = scmp.eq.s32.totalorder %s384_s15, 1  ;;  %p40_p7 = scmp.eq.s32.totalorder %s37_s20, 0 }
   0xf   : > { %p682_p8 = por %p56_p5, %p55_p3  ;;  %p113_p10 = scmp.eq.s32.totalorder %s385_s16, 1 }
  0x10   : > { %p686_p9 = por %p107_p6, %p49_p1  ;;  %p417_p13 = scmp.lt.s32.totalorder %s614_s14, 2 }
  0x11   : > { %s866_s21 = scalar_select %p682_p8, 1, 0 }
  0x12   : > { %s867_s22 = scalar_select %p686_p9, 1, 0 }
  0x13   : > { %s691_s23 = scalar_select %p40_p7, %s602_s11, %s42_s18  }
  0x14   : > { %p693_p11 = por %p113_p10, %p55_p3  ;;  %s700_s25 = sand.u32 1, %s602_s11  }
  0x15   : > { %s388_s26 = sshll.u32 %s700_s25, 3  ;;  %s389_s27 = sshll.u32 %s610_s13, 7 }
  0x16   : > { %s868_s24 = scalar_select %p693_p11, 1, 0 }
  0x17   : > { %s709_s30 = scalar_lea.hbm %s860_s0, %s389_s27  ;;  %s137_s3 = scalar_lea.vmem [#allocation3], %s388_s26 }
  0x18   : > { %s145_s4 = sshll.u32 %s137_s3, 4  ;;  %p717_p0 = pnand %p417_p13, %p676_p4  ;;  %s713_s4 = int_to_ptr.vmem [resolvable:$true] %s145_s4 }
  0x19   : > { %s134_s6 = scalar_lea.sflag [#allocation4], %s700_s25  ;;  %s468_s7 = scalar_lea.hbm %s709_s30, 128 }
  0x1a   : > { %p469_p3 = scmp.ne.s32.totalorder %s709_s30, %s468_s7  ;;  %p470_p5 = pneg %p717_p0 }
  0x1b   : > { %s473_s16 = scalar_lea.hbm %s860_s0, 256  ;;  %p474_p4 = scmp.lt.u32.totalorder %s709_s30, %s860_s0 }
  0x1c   : > { %p471_p6 = pnand %p470_p5, %p469_p3  ;;  %p475_p10 = scmp.lt.u32.totalorder %s473_s16, %s468_s7 }
  0x1d   : > { %p477_p12 = scmp.lt.u32.totalorder %s468_s7, %s709_s30 }
  0x1e   : > { %p472_p7 = pneg %p471_p6  ;;  %p476_p13 = por %p475_p10, %p474_p4 }
  0x20   : > { %p478_p1 = por %p477_p12, %p476_p13 }
  0x22   : > { %p479_p2 = pnand %p478_p1, %p472_p7 }
  0x24   : > { %482 = shalt.err (!%p479_p2)
}
  0x25   : > { %s483_s20 = scalar_lea.vmem %s713_s4, 128  ;;  %s616_s28 = smov [#allocation3]  }
  0x26   : > { %p484_p3 = scmp.ne.s32.totalorder %s713_s4, %s483_s20  ;;  %s488_s29 = sshll.u32 %s616_s28, 4  ;;  %s489_s29 = int_to_ptr.vmem [resolvable:$false] %s488_s29 }
  0x27   : > { %s490_s3 = scalar_lea.vmem %s489_s29, 256  ;;  %p491_p9 = scmp.lt.s32.totalorder %s713_s4, %s489_s29 }
  0x28   : > { %p486_p6 = pnand %p484_p3, %p470_p5  ;;  %p492_p4 = scmp.lt.s32.totalorder %s490_s3, %s483_s20 }
  0x2a   : > { %p487_p11 = pneg %p486_p6  ;;  %p493_p10 = por %p492_p4, %p491_p9 }
  0x2c   : > { %p494_p12 = pnand %p493_p10, %p487_p11 }
  0x2e   : > { %497 = shalt.err (!%p494_p12)
}
  0x2f   : > { %409 = dma.hbm_to_vmem [thread:$0]  (!%p717_p0), %s709_s30, 128, %s713_s4, %s134_s6  }
  0x30   : > { %p870_p1 = scmp.lt.s32.totalorder %s614_s14, 3  ;;  %p871_p2 = scmp.ge.s32.totalorder %s614_s14, 1 }
  0x31   : > { %s762_s16 = scalar_lea.hbm %s861_s1, %s389_s27  ;;  %s156_s18 = scalar_lea.vmem [#allocation6], %s388_s26 }
  0x32   : > { %p753_p7 = pnand %p871_p2, %p870_p1  ;;  %s164_s19 = sshll.u32 %s156_s18, 4  ;;  %s165_s19 = int_to_ptr.vmem [resolvable:$true] %s164_s19 }
  0x33   : > { %s153_s30 = scalar_lea.sflag [#allocation7], %s700_s25  ;;  %s498_s4 = scalar_lea.hbm %s762_s16, 128 }
  0x34   : > { %s872_s7 = scalar_select %p753_p7, 1, 0 }
  0x35   : > { %p499_p9 = scmp.ne.s32.totalorder %s762_s16, %s498_s4  ;;  %s503_s27 = scalar_lea.hbm %s861_s1, 256 }
  0x36   : > { %p504_p3 = scmp.lt.u32.totalorder %s762_s16, %s861_s1  ;;  %p505_p6 = scmp.lt.u32.totalorder %s503_s27, %s498_s4 }
  0x37   : > { %p501_p11 = pnand %p499_p9, %p470_p5  ;;  %p507_p10 = scmp.lt.u32.totalorder %s498_s4, %s762_s16 }
  0x38   : > { %p506_p4 = por %p505_p6, %p504_p3 }
  0x39   : > { %p502_p13 = pneg %p501_p11 }
  0x3a   : > { %p508_p12 = por %p507_p10, %p506_p4 }
  0x3c   : > { %p509_p1 = pnand %p508_p12, %p502_p13 }
  0x3e   : > { %512 = shalt.err (!%p509_p1)
}
  0x3f   : > { %s513_s25 = scalar_lea.vmem %s165_s19, 128  ;;  %s617_s26 = smov [#allocation6]  }
  0x40   : > { %p514_p2 = scmp.ne.s32.totalorder %s165_s19, %s513_s25  ;;  %s518_s3 = sshll.u32 %s617_s26, 4  ;;  %s519_s3 = int_to_ptr.vmem [resolvable:$false] %s518_s3 }
  0x41   : > { %s520_s8 = scalar_lea.vmem %s519_s3, 256  ;;  %p521_p8 = scmp.lt.s32.totalorder %s165_s19, %s519_s3 }
  0x42   : > { %p516_p9 = pnand %p514_p2, %p470_p5  ;;  %p522_p7 = scmp.lt.s32.totalorder %s520_s8, %s513_s25 }
  0x44   : > { %p517_p11 = pneg %p516_p9  ;;  %p523_p3 = por %p522_p7, %p521_p8 }
  0x46   : > { %p524_p6 = pnand %p523_p3, %p517_p11 }
  0x48   : > { %527 = shalt.err (!%p524_p6)
}
  0x49   : > { %412 = dma.hbm_to_vmem [thread:$0]  (!%p717_p0), %s762_s16, 128, %s165_s19, %s153_s30  }
  0x4a   : > { %p873_p13 = scmp.ne.s32.totalorder %s872_s7, 0 }
  0x4b   : > { %s789_s15 = sand.u32 (!%p873_p13), 1, %s598_s10   ;;  %p874_p8 = scmp.ne.s32.totalorder (!%p873_p13), %s866_s21, 0 }
  0x4c   : > { %173 = sbr.rel (%p873_p13) target bundleno = 127 (0x7f), region = 28  ;;  %s792_s18 = sshll.u32 (!%p873_p13), %s789_s15, 3 }
  0x4d   : > { %s176_s4 = scalar_lea.sflag (!%p873_p13), [#allocation4], %s789_s15  ;;  %s179_s6 = scalar_lea.vmem (!%p873_p13), [#allocation3], %s792_s18 }
  0x53   : > { %581 = dma.done.wait (%p874_p8), %s176_s4, 128  }
  0x54   : > { %583 = vsyncadd (%p874_p8), %s176_s4, 4294967168  ;;  %s185_s5 = scalar_lea.sflag [#allocation7], %s789_s15  ;;  %s188_s7 = scalar_lea.vmem [#allocation6], %s792_s18 }
  0x55   : > { %585 = dma.done.wait (%p874_p8), %s185_s5, 128  }
  0x56   : > { %587 = vsyncadd (%p874_p8), %s185_s5, 4294967168  ;;  %v618_v0 = vmov 0.0   ;;  %v219_v1 = vld [vmem:[%s179_s6] sm:$0xff]  ;;  %v220_v2 = vld [vmem:[%s188_s7] sm:$0xff]  ;;  %s213_s21 = scalar_lea.vmem [#allocation8], %s792_s18  ;;  %s397_s19 = sshll.u32 %s606_s12, 7 }
  0x57   : > { %218 = vst [vmem:[#allocation2] sm:$0xff] %v618_v0  ;;  %v221_v3 = vsub.f32 %v219_v1, %v220_v2  ;;  %v233_v4 = vmul.f32 %v220_v2, %v219_v1  ;;  %v243_v5 = vmul.f32 %v219_v1, %v219_v1  ;;  %v253_v6 = vmul.f32 %v220_v2, %v220_v2  ;;  %s281_s16 = sshll.u32 %s213_s21, 4  ;;  %s813_s27 = scalar_lea.hbm %s862_s2, %s397_s19  ;;  %s808_s16 = int_to_ptr.vmem [resolvable:$true] %s281_s16 }
  0x58   : > { %s268_s28 = scalar_lea.sflag [#allocation5], %s789_s15  ;;  %s528_s29 = scalar_lea.vmem %s808_s16, 128 }
  0x59   : > { %v223_v7 = vmul.f32 %v221_v3, %v221_v3  ;;  %v234_v8 = vrot.slane %v233_v4, 4  ;;  %v244_v9 = vrot.slane %v243_v5, 4  ;;  %v254_v10 = vrot.slane %v253_v6, 4  ;;  %p529_p0 = scmp.ne.s32.totalorder %s808_s16, %s528_s29  ;;  %p875_p5 = scmp.ne.s32.totalorder %s867_s22, 0 }
  0x5a   : > { %s619_s25 = smov [#allocation8]  }
  0x5b   : > { %v224_v11 = vrot.slane %v223_v7, 4  ;;  %v235_v12 = vadd.f32 %v234_v8, %v233_v4  ;;  %v245_v13 = vadd.f32 %v244_v9, %v243_v5  ;;  %v255_v14 = vadd.f32 %v254_v10, %v253_v6  ;;  %p530_p7 = pnand %p529_p0, %p875_p5  ;;  %s532_s12 = sshll.u32 %s619_s25, 4  ;;  %s533_s12 = int_to_ptr.vmem [resolvable:$false] %s532_s12 }
  0x5c   : > { %s534_s26 = scalar_lea.vmem %s533_s12, 256  ;;  %p535_p10 = scmp.lt.s32.totalorder %s808_s16, %s533_s12 }
  0x5d   : > { %v225_v15 = vadd.f32 %v224_v11, %v223_v7  ;;  %v236_v16 = vrot.slane %v235_v12, 2  ;;  %v246_v17 = vrot.slane %v245_v13, 2  ;;  %v256_v18 = vrot.slane %v255_v14, 2  ;;  %p531_p4 = pneg %p530_p7  ;;  %p536_p12 = scmp.lt.s32.totalorder %s534_s26, %s528_s29 }
  0x5e   : > { %v232_v27 = vld [vmem:[#allocation2 + $0x1] sm:$0x1]  ;;  %v242_v28 = vld [vmem:[#allocation2 + $0x2] sm:$0x1]  ;;  %v252_v29 = vld [vmem:[#allocation2 + $0x3] sm:$0x1] }
  0x5f   : > { %v226_v19 = vrot.slane %v225_v15, 2  ;;  %v237_v20 = vadd.f32 %v236_v16, %v235_v12  ;;  %v247_v21 = vadd.f32 %v246_v17, %v245_v13  ;;  %v257_v22 = vadd.f32 %v256_v18, %v255_v14  ;;  %v222_v34 = vld [vmem:[#allocation2] sm:$0x1]  ;;  %p537_p1 = por %p536_p12, %p535_p10 }
  0x61   : > { %v227_v23 = vadd.f32 %v226_v19, %v225_v15  ;;  %v238_v24 = vrot.slane %v237_v20, 1  ;;  %v248_v25 = vrot.slane %v247_v21, 1  ;;  %v258_v26 = vrot.slane %v257_v22, 1  ;;  %p538_p2 = pnand %p537_p1, %p531_p4 }
  0x63   : > { %v228_v30 = vrot.slane %v227_v23, 1  ;;  %v239_v31 = vadd.f32 %v238_v24, %v237_v20  ;;  %v249_v32 = vadd.f32 %v248_v25, %v247_v21  ;;  %v259_v33 = vadd.f32 %v258_v26, %v257_v22 }
  0x65   : > { %v229_v35 = vadd.f32 %v228_v30, %v227_v23  ;;  %v240_v36 = vadd.f32 %v239_v31, %v232_v27  ;;  %v250_v37 = vadd.f32 %v249_v32, %v242_v28  ;;  %v260_v38 = vadd.f32 %v259_v33, %v252_v29 }
  0x67   : > { %v230_v39 = vadd.f32 %v229_v35, %v222_v34  ;;  %241 = vst [vmem:[#allocation2 + $0x1] sm:$0x1] %v240_v36  ;;  %251 = vst [vmem:[#allocation2 + $0x2] sm:$0x1] %v250_v37 }
  0x68   : > { %261 = vst [vmem:[#allocation2 + $0x3] sm:$0x1] %v260_v38 }
  0x69   : > { %231 = vst [vmem:[#allocation2] sm:$0x1] %v230_v39 }
  0x70   : > { %v265_v40 = vld [vmem:[#allocation2] sm:$0xff] }
  0x71   : > { %266 = vst [vmem:[%s213_s21] sm:$0xff] %v265_v40 }
  0x72   : > { %541 = shalt.err (!%p538_p2)
}
  0x73   : > { %s542_s3 = scalar_lea.hbm %s813_s27, 128  ;;  %s546_s18 = scalar_lea.hbm %s862_s2, 256 }
  0x74   : > { %p543_p9 = scmp.ne.s32.totalorder %s813_s27, %s542_s3  ;;  %p547_p6 = scmp.lt.u32.totalorder %s813_s27, %s862_s2 }
  0x75   : > { %p548_p13 = scmp.lt.u32.totalorder %s546_s18, %s542_s3  ;;  %p550_p0 = scmp.lt.u32.totalorder %s542_s3, %s813_s27 }
  0x76   : > { %p544_p11 = pnand %p543_p9, %p875_p5 }
  0x77   : > { %p549_p8 = por %p548_p13, %p547_p6 }
  0x78   : > { %p545_p3 = pneg %p544_p11 }
  0x79   : > { %p551_p7 = por %p550_p0, %p549_p8 }
  0x7b   : > { %p552_p4 = pnand %p551_p7, %p545_p3 }
  0x7d   : > { %555 = shalt.err (!%p552_p4)
}
  0x7e   : > { %404 = dma.vmem_to_hbm [thread:$0]  (%p875_p5), %s808_s16, 128, %s813_s27, %s268_s28  }
  0x7f PF: > { %s293_s5 = sand.u32 1, %s594_s9   ;;  %p876_p10 = scmp.ne.s32.totalorder %s868_s24, 0 }
  0x80   : > { %p877_p12 = scmp.ge.s32.totalorder %s614_s14, 2  ;;  %s294_s7 = scalar_lea.sflag [#allocation5], %s293_s5 }
  0x82   : > { %p414_p1 = pnand %p877_p12, %p876_p10 }
  0x84   : > { %589 = dma.done.wait (!%p414_p1), %s294_s7, 128  }
  0x85   : > { %591 = vsyncadd (!%p414_p1), %s294_s7, 4294967168  ;;  %s21_s14 = sadd.s32 1, %s614_s14   ;;  %s878_s9 = smov %s598_s10 }
  0x86   : > { %p18_p2 = scmp.ge.s32.totalorder %s21_s14, 4   ;;  %s879_s10 = smov %s602_s11 }
  0x87   : > { %s880_s11 = smov %s691_s23  ;;  %s881_s12 = smov %s610_s13 }
  0x88   : > { %s882_s13 = smov %s884_s17  ;;  %20 = sbr.rel (!%p18_p2) target bundleno = 8 (0x8), region = 94 }
  0x8f   :  { %299 = vsyncpa [#allocation4], 1 }
  0x90   :  { %301 = vsyncpa [#allocation4 + $0x1], 1 }
  0x91   :  { %302 = vsyncpa [#allocation7], 1 }
  0x92   :  { %304 = vsyncpa [#allocation7 + $0x1], 1 }
  0x93   :  { %305 = vsyncpa [#allocation5], 1 }
  0x94   :  { %307 = vsyncpa [#allocation5 + $0x1], 1 }

</bundles_post_ra>
